<compile_context>
chip_gen: v7x
topology: tpu7x:2x2x1
jax: 0.10.0
libtpu: 0.0.40
codegen_flags: <defaults>
</compile_context>

<pallas_src>
import functools

import jax
import jax.numpy as jnp
from jax.experimental import pallas as pl
from jax.experimental.pallas import tpu as pltpu


def _local_pool_kernel(tb, agent_ref, x_hbm, o_ref, buf, sems):
    # agent_ref: SMEM int32[B]        (scalar-prefetched node indices)
    # x_hbm:     HBM ref [B, N, F]    (memory_space=pl.ANY, manual DMA)
    # o_ref:     VMEM (tb, F)         output tile for this group of batches
    # buf:       VMEM (tb, F)         gather landing buffer
    # sems:      DMA semaphores, one per row in the group
    g = pl.program_id(0)
    b_last = x_hbm.shape[0] - 1

    copies = []
    for r in range(tb):  # tb is small & static -> fully unrolled
        # clamp so padded tail rows (b >= B) re-fetch the last real batch
        b = jnp.minimum(g * tb + r, b_last)
        idx = agent_ref[b]
        cp = pltpu.make_async_copy(x_hbm.at[b, idx], buf.at[r], sems.at[r])
        cp.start()
        copies.append(cp)
    for cp in copies:
        cp.wait()

    # dense (tb, F) store into the pipelined output tile
    o_ref[...] = buf[...]


def local_pooling(x, edge_index, agent_nodes, *, tb=8):
    """Pallas equivalent of LocalPooling.forward.

    x:           [B, N, F] float array
    edge_index:  unused (kept for API parity with the PyTorch module)
    agent_nodes: [B] integer indices into the node axis
    returns:     [B, F]

    Note: for tiny B/F a plain x[jnp.arange(B), agent_nodes] is cheaper than
    launching a kernel; the Pallas path is intended for large B or for fusion.
    """
    del edge_index  # not used by the forward pass
    B, N, F = x.shape

    # bounds safety: VMEM/HBM DMAs are not runtime-checked
    agent_nodes = jnp.clip(agent_nodes.astype(jnp.int32), 0, N - 1)

    # group size: multiple of 8 sublanes, at least 8
    tb = max(8, ((int(tb) + 7) // 8) * 8)
    num_groups = pl.cdiv(B, tb)
    b_pad = num_groups * tb

    out = pl.pallas_call(
        functools.partial(_local_pool_kernel, tb),
        out_shape=jax.ShapeDtypeStruct((b_pad, F), x.dtype),
        grid_spec=pltpu.PrefetchScalarGridSpec(
            num_scalar_prefetch=1,                 # agent_nodes -> SMEM
            grid=(num_groups,),
            in_specs=[
                pl.BlockSpec(memory_space=pl.ANY),  # x stays in HBM
            ],
            out_specs=pl.BlockSpec((tb, F), lambda g, agent: (g, 0)),
            scratch_shapes=[
                pltpu.VMEM((tb, F), x.dtype),
                pltpu.SemaphoreType.DMA((tb,)),
            ],
        ),
        compiler_params=pltpu.CompilerParams(
            dimension_semantics=("parallel",),      # shards groups on v7x's 2 TCs
        ),
    )(agent_nodes, x)

    return out[:B]


if __name__ == "__main__":
    key = jax.random.PRNGKey(0)
    kx, ki = jax.random.split(key)

    B, N, F = 2, 8, 128                 # batch, nodes per graph, feature dim
    x = jax.random.normal(kx, (B, N, F), dtype=jnp.float32)
    agent_nodes = jax.random.randint(ki, (B,), 0, N, dtype=jnp.int32)
    # dummy edge_index (unused by the forward pass, present for API parity)
    edge_index = jnp.zeros((2, 16), dtype=jnp.int32)

    out = local_pooling(x, edge_index, agent_nodes)
    out = jax.block_until_ready(out)

    # reference: x[range(B), agent_nodes, :]
    ref = x[jnp.arange(B), agent_nodes, :]
    assert out.shape == (B, F)
    assert jnp.allclose(out, ref), "mismatch vs. reference gather"

    print("KERNEL_OK")
</pallas_src>

<mosaic_0001>
module attributes {stable_mosaic.version = 11 : i64} {
  func.func @_local_pool_kernel(%arg0: i32, %arg1: memref<2xi32, #tpu.memory_space<smem>>, %arg2: memref<2x8x128xf32, #tpu.memory_space<any>>, %arg3: memref<8x128xf32, #tpu.memory_space<vmem>>, %arg4: memref<8x128xf32, #tpu.memory_space<vmem>>, %arg5: memref<8x!tpu.dma_semaphore, #tpu.memory_space<semaphore_mem>>) attributes {dimension_semantics = [#tpu.dimension_semantics<parallel>], iteration_bounds = array<i64: 1>, scalar_prefetch = 1 : i64, scratch_operands = 2 : i64, tpu.core_type = #tpu.core_type<tc>, window_params = [{}, {transform_indices = @transform_1, window_bounds = array<i64: 8, 128>}]} {
    %c8_i32 = arith.constant 8 : i32
    %0 = arith.muli %arg0, %c8_i32 : i32
    %c0_i32 = arith.constant 0 : i32
    %1 = arith.addi %0, %c0_i32 : i32
    %c1_i32 = arith.constant 1 : i32
    %2 = arith.minsi %1, %c1_i32 : i32
    %3 = arith.index_cast %2 : i32 to index
    %4 = memref.load %arg1[%3] : memref<2xi32, #tpu.memory_space<smem>>
    %c0_i32_0 = arith.constant 0 : i32
    %c0_i32_1 = arith.constant 0 : i32
    %c0_i32_2 = arith.constant 0 : i32
    %5 = tpu.memref_slice %arg2[%2, %4, %c0_i32_2] : memref<2x8x128xf32, #tpu.memory_space<any>> -> memref<1x1x128xf32, #tpu.memory_space<any>>
    %6 = tpu.memref_squeeze %5 : memref<1x1x128xf32, #tpu.memory_space<any>> -> memref<128xf32, #tpu.memory_space<any>>
    %c0_i32_3 = arith.constant 0 : i32
    %7 = tpu.memref_slice %arg4[%c0_i32_0, %c0_i32_3] : memref<8x128xf32, #tpu.memory_space<vmem>> -> memref<1x128xf32, #tpu.memory_space<vmem>>
    %8 = tpu.memref_squeeze %7 : memref<1x128xf32, #tpu.memory_space<vmem>> -> memref<128xf32, #tpu.memory_space<vmem>>
    %9 = tpu.memref_slice %arg5[%c0_i32_1] : memref<8x!tpu.dma_semaphore, #tpu.memory_space<semaphore_mem>> -> memref<1x!tpu.dma_semaphore, #tpu.memory_space<semaphore_mem>>
    %10 = tpu.memref_squeeze %9 : memref<1x!tpu.dma_semaphore, #tpu.memory_space<semaphore_mem>> -> memref<!tpu.dma_semaphore, #tpu.memory_space<semaphore_mem>>
    tpu.enqueue_dma source(%6 : memref<128xf32, #tpu.memory_space<any>>) target(%8 : memref<128xf32, #tpu.memory_space<vmem>>) target_semaphore(%10 : memref<!tpu.dma_semaphore, #tpu.memory_space<semaphore_mem>>)
    %c8_i32_4 = arith.constant 8 : i32
    %11 = arith.muli %arg0, %c8_i32_4 : i32
    %c1_i32_5 = arith.constant 1 : i32
    %12 = arith.addi %11, %c1_i32_5 : i32
    %c1_i32_6 = arith.constant 1 : i32
    %13 = arith.minsi %12, %c1_i32_6 : i32
    %14 = arith.index_cast %13 : i32 to index
    %15 = memref.load %arg1[%14] : memref<2xi32, #tpu.memory_space<smem>>
    %c1_i32_7 = arith.constant 1 : i32
    %c1_i32_8 = arith.constant 1 : i32
    %c0_i32_9 = arith.constant 0 : i32
    %16 = tpu.memref_slice %arg2[%13, %15, %c0_i32_9] : memref<2x8x128xf32, #tpu.memory_space<any>> -> memref<1x1x128xf32, #tpu.memory_space<any>>
    %17 = tpu.memref_squeeze %16 : memref<1x1x128xf32, #tpu.memory_space<any>> -> memref<128xf32, #tpu.memory_space<any>>
    %c0_i32_10 = arith.constant 0 : i32
    %18 = tpu.memref_slice %arg4[%c1_i32_7, %c0_i32_10] : memref<8x128xf32, #tpu.memory_space<vmem>> -> memref<1x128xf32, #tpu.memory_space<vmem>>
    %19 = tpu.memref_squeeze %18 : memref<1x128xf32, #tpu.memory_space<vmem>> -> memref<128xf32, #tpu.memory_space<vmem>>
    %20 = tpu.memref_slice %arg5[%c1_i32_8] : memref<8x!tpu.dma_semaphore, #tpu.memory_space<semaphore_mem>> -> memref<1x!tpu.dma_semaphore, #tpu.memory_space<semaphore_mem>>
    %21 = tpu.memref_squeeze %20 : memref<1x!tpu.dma_semaphore, #tpu.memory_space<semaphore_mem>> -> memref<!tpu.dma_semaphore, #tpu.memory_space<semaphore_mem>>
    tpu.enqueue_dma source(%17 : memref<128xf32, #tpu.memory_space<any>>) target(%19 : memref<128xf32, #tpu.memory_space<vmem>>) target_semaphore(%21 : memref<!tpu.dma_semaphore, #tpu.memory_space<semaphore_mem>>)
    %c8_i32_11 = arith.constant 8 : i32
    %22 = arith.muli %arg0, %c8_i32_11 : i32
    %c2_i32 = arith.constant 2 : i32
    %23 = arith.addi %22, %c2_i32 : i32
    %c1_i32_12 = arith.constant 1 : i32
    %24 = arith.minsi %23, %c1_i32_12 : i32
    %25 = arith.index_cast %24 : i32 to index
    %26 = memref.load %arg1[%25] : memref<2xi32, #tpu.memory_space<smem>>
    %c2_i32_13 = arith.constant 2 : i32
    %c2_i32_14 = arith.constant 2 : i32
    %c0_i32_15 = arith.constant 0 : i32
    %27 = tpu.memref_slice %arg2[%24, %26, %c0_i32_15] : memref<2x8x128xf32, #tpu.memory_space<any>> -> memref<1x1x128xf32, #tpu.memory_space<any>>
    %28 = tpu.memref_squeeze %27 : memref<1x1x128xf32, #tpu.memory_space<any>> -> memref<128xf32, #tpu.memory_space<any>>
    %c0_i32_16 = arith.constant 0 : i32
    %29 = tpu.memref_slice %arg4[%c2_i32_13, %c0_i32_16] : memref<8x128xf32, #tpu.memory_space<vmem>> -> memref<1x128xf32, #tpu.memory_space<vmem>>
    %30 = tpu.memref_squeeze %29 : memref<1x128xf32, #tpu.memory_space<vmem>> -> memref<128xf32, #tpu.memory_space<vmem>>
    %31 = tpu.memref_slice %arg5[%c2_i32_14] : memref<8x!tpu.dma_semaphore, #tpu.memory_space<semaphore_mem>> -> memref<1x!tpu.dma_semaphore, #tpu.memory_space<semaphore_mem>>
    %32 = tpu.memref_squeeze %31 : memref<1x!tpu.dma_semaphore, #tpu.memory_space<semaphore_mem>> -> memref<!tpu.dma_semaphore, #tpu.memory_space<semaphore_mem>>
    tpu.enqueue_dma source(%28 : memref<128xf32, #tpu.memory_space<any>>) target(%30 : memref<128xf32, #tpu.memory_space<vmem>>) target_semaphore(%32 : memref<!tpu.dma_semaphore, #tpu.memory_space<semaphore_mem>>)
    %c8_i32_17 = arith.constant 8 : i32
    %33 = arith.muli %arg0, %c8_i32_17 : i32
    %c3_i32 = arith.constant 3 : i32
    %34 = arith.addi %33, %c3_i32 : i32
    %c1_i32_18 = arith.constant 1 : i32
    %35 = arith.minsi %34, %c1_i32_18 : i32
    %36 = arith.index_cast %35 : i32 to index
    %37 = memref.load %arg1[%36] : memref<2xi32, #tpu.memory_space<smem>>
    %c3_i32_19 = arith.constant 3 : i32
    %c3_i32_20 = arith.constant 3 : i32
    %c0_i32_21 = arith.constant 0 : i32
    %38 = tpu.memref_slice %arg2[%35, %37, %c0_i32_21] : memref<2x8x128xf32, #tpu.memory_space<any>> -> memref<1x1x128xf32, #tpu.memory_space<any>>
    %39 = tpu.memref_squeeze %38 : memref<1x1x128xf32, #tpu.memory_space<any>> -> memref<128xf32, #tpu.memory_space<any>>
    %c0_i32_22 = arith.constant 0 : i32
    %40 = tpu.memref_slice %arg4[%c3_i32_19, %c0_i32_22] : memref<8x128xf32, #tpu.memory_space<vmem>> -> memref<1x128xf32, #tpu.memory_space<vmem>>
    %41 = tpu.memref_squeeze %40 : memref<1x128xf32, #tpu.memory_space<vmem>> -> memref<128xf32, #tpu.memory_space<vmem>>
    %42 = tpu.memref_slice %arg5[%c3_i32_20] : memref<8x!tpu.dma_semaphore, #tpu.memory_space<semaphore_mem>> -> memref<1x!tpu.dma_semaphore, #tpu.memory_space<semaphore_mem>>
    %43 = tpu.memref_squeeze %42 : memref<1x!tpu.dma_semaphore, #tpu.memory_space<semaphore_mem>> -> memref<!tpu.dma_semaphore, #tpu.memory_space<semaphore_mem>>
    tpu.enqueue_dma source(%39 : memref<128xf32, #tpu.memory_space<any>>) target(%41 : memref<128xf32, #tpu.memory_space<vmem>>) target_semaphore(%43 : memref<!tpu.dma_semaphore, #tpu.memory_space<semaphore_mem>>)
    %c8_i32_23 = arith.constant 8 : i32
    %44 = arith.muli %arg0, %c8_i32_23 : i32
    %c4_i32 = arith.constant 4 : i32
    %45 = arith.addi %44, %c4_i32 : i32
    %c1_i32_24 = arith.constant 1 : i32
    %46 = arith.minsi %45, %c1_i32_24 : i32
    %47 = arith.index_cast %46 : i32 to index
    %48 = memref.load %arg1[%47] : memref<2xi32, #tpu.memory_space<smem>>
    %c4_i32_25 = arith.constant 4 : i32
    %c4_i32_26 = arith.constant 4 : i32
    %c0_i32_27 = arith.constant 0 : i32
    %49 = tpu.memref_slice %arg2[%46, %48, %c0_i32_27] : memref<2x8x128xf32, #tpu.memory_space<any>> -> memref<1x1x128xf32, #tpu.memory_space<any>>
    %50 = tpu.memref_squeeze %49 : memref<1x1x128xf32, #tpu.memory_space<any>> -> memref<128xf32, #tpu.memory_space<any>>
    %c0_i32_28 = arith.constant 0 : i32
    %51 = tpu.memref_slice %arg4[%c4_i32_25, %c0_i32_28] : memref<8x128xf32, #tpu.memory_space<vmem>> -> memref<1x128xf32, #tpu.memory_space<vmem>>
    %52 = tpu.memref_squeeze %51 : memref<1x128xf32, #tpu.memory_space<vmem>> -> memref<128xf32, #tpu.memory_space<vmem>>
    %53 = tpu.memref_slice %arg5[%c4_i32_26] : memref<8x!tpu.dma_semaphore, #tpu.memory_space<semaphore_mem>> -> memref<1x!tpu.dma_semaphore, #tpu.memory_space<semaphore_mem>>
    %54 = tpu.memref_squeeze %53 : memref<1x!tpu.dma_semaphore, #tpu.memory_space<semaphore_mem>> -> memref<!tpu.dma_semaphore, #tpu.memory_space<semaphore_mem>>
    tpu.enqueue_dma source(%50 : memref<128xf32, #tpu.memory_space<any>>) target(%52 : memref<128xf32, #tpu.memory_space<vmem>>) target_semaphore(%54 : memref<!tpu.dma_semaphore, #tpu.memory_space<semaphore_mem>>)
    %c8_i32_29 = arith.constant 8 : i32
    %55 = arith.muli %arg0, %c8_i32_29 : i32
    %c5_i32 = arith.constant 5 : i32
    %56 = arith.addi %55, %c5_i32 : i32
    %c1_i32_30 = arith.constant 1 : i32
    %57 = arith.minsi %56, %c1_i32_30 : i32
    %58 = arith.index_cast %57 : i32 to index
    %59 = memref.load %arg1[%58] : memref<2xi32, #tpu.memory_space<smem>>
    %c5_i32_31 = arith.constant 5 : i32
    %c5_i32_32 = arith.constant 5 : i32
    %c0_i32_33 = arith.constant 0 : i32
    %60 = tpu.memref_slice %arg2[%57, %59, %c0_i32_33] : memref<2x8x128xf32, #tpu.memory_space<any>> -> memref<1x1x128xf32, #tpu.memory_space<any>>
    %61 = tpu.memref_squeeze %60 : memref<1x1x128xf32, #tpu.memory_space<any>> -> memref<128xf32, #tpu.memory_space<any>>
    %c0_i32_34 = arith.constant 0 : i32
    %62 = tpu.memref_slice %arg4[%c5_i32_31, %c0_i32_34] : memref<8x128xf32, #tpu.memory_space<vmem>> -> memref<1x128xf32, #tpu.memory_space<vmem>>
    %63 = tpu.memref_squeeze %62 : memref<1x128xf32, #tpu.memory_space<vmem>> -> memref<128xf32, #tpu.memory_space<vmem>>
    %64 = tpu.memref_slice %arg5[%c5_i32_32] : memref<8x!tpu.dma_semaphore, #tpu.memory_space<semaphore_mem>> -> memref<1x!tpu.dma_semaphore, #tpu.memory_space<semaphore_mem>>
    %65 = tpu.memref_squeeze %64 : memref<1x!tpu.dma_semaphore, #tpu.memory_space<semaphore_mem>> -> memref<!tpu.dma_semaphore, #tpu.memory_space<semaphore_mem>>
    tpu.enqueue_dma source(%61 : memref<128xf32, #tpu.memory_space<any>>) target(%63 : memref<128xf32, #tpu.memory_space<vmem>>) target_semaphore(%65 : memref<!tpu.dma_semaphore, #tpu.memory_space<semaphore_mem>>)
    %c8_i32_35 = arith.constant 8 : i32
    %66 = arith.muli %arg0, %c8_i32_35 : i32
    %c6_i32 = arith.constant 6 : i32
    %67 = arith.addi %66, %c6_i32 : i32
    %c1_i32_36 = arith.constant 1 : i32
    %68 = arith.minsi %67, %c1_i32_36 : i32
    %69 = arith.index_cast %68 : i32 to index
    %70 = memref.load %arg1[%69] : memref<2xi32, #tpu.memory_space<smem>>
    %c6_i32_37 = arith.constant 6 : i32
    %c6_i32_38 = arith.constant 6 : i32
    %c0_i32_39 = arith.constant 0 : i32
    %71 = tpu.memref_slice %arg2[%68, %70, %c0_i32_39] : memref<2x8x128xf32, #tpu.memory_space<any>> -> memref<1x1x128xf32, #tpu.memory_space<any>>
    %72 = tpu.memref_squeeze %71 : memref<1x1x128xf32, #tpu.memory_space<any>> -> memref<128xf32, #tpu.memory_space<any>>
    %c0_i32_40 = arith.constant 0 : i32
    %73 = tpu.memref_slice %arg4[%c6_i32_37, %c0_i32_40] : memref<8x128xf32, #tpu.memory_space<vmem>> -> memref<1x128xf32, #tpu.memory_space<vmem>>
    %74 = tpu.memref_squeeze %73 : memref<1x128xf32, #tpu.memory_space<vmem>> -> memref<128xf32, #tpu.memory_space<vmem>>
    %75 = tpu.memref_slice %arg5[%c6_i32_38] : memref<8x!tpu.dma_semaphore, #tpu.memory_space<semaphore_mem>> -> memref<1x!tpu.dma_semaphore, #tpu.memory_space<semaphore_mem>>
    %76 = tpu.memref_squeeze %75 : memref<1x!tpu.dma_semaphore, #tpu.memory_space<semaphore_mem>> -> memref<!tpu.dma_semaphore, #tpu.memory_space<semaphore_mem>>
    tpu.enqueue_dma source(%72 : memref<128xf32, #tpu.memory_space<any>>) target(%74 : memref<128xf32, #tpu.memory_space<vmem>>) target_semaphore(%76 : memref<!tpu.dma_semaphore, #tpu.memory_space<semaphore_mem>>)
    %c8_i32_41 = arith.constant 8 : i32
    %77 = arith.muli %arg0, %c8_i32_41 : i32
    %c7_i32 = arith.constant 7 : i32
    %78 = arith.addi %77, %c7_i32 : i32
    %c1_i32_42 = arith.constant 1 : i32
    %79 = arith.minsi %78, %c1_i32_42 : i32
    %80 = arith.index_cast %79 : i32 to index
    %81 = memref.load %arg1[%80] : memref<2xi32, #tpu.memory_space<smem>>
    %c7_i32_43 = arith.constant 7 : i32
    %c7_i32_44 = arith.constant 7 : i32
    %c0_i32_45 = arith.constant 0 : i32
    %82 = tpu.memref_slice %arg2[%79, %81, %c0_i32_45] : memref<2x8x128xf32, #tpu.memory_space<any>> -> memref<1x1x128xf32, #tpu.memory_space<any>>
    %83 = tpu.memref_squeeze %82 : memref<1x1x128xf32, #tpu.memory_space<any>> -> memref<128xf32, #tpu.memory_space<any>>
    %c0_i32_46 = arith.constant 0 : i32
    %84 = tpu.memref_slice %arg4[%c7_i32_43, %c0_i32_46] : memref<8x128xf32, #tpu.memory_space<vmem>> -> memref<1x128xf32, #tpu.memory_space<vmem>>
    %85 = tpu.memref_squeeze %84 : memref<1x128xf32, #tpu.memory_space<vmem>> -> memref<128xf32, #tpu.memory_space<vmem>>
    %86 = tpu.memref_slice %arg5[%c7_i32_44] : memref<8x!tpu.dma_semaphore, #tpu.memory_space<semaphore_mem>> -> memref<1x!tpu.dma_semaphore, #tpu.memory_space<semaphore_mem>>
    %87 = tpu.memref_squeeze %86 : memref<1x!tpu.dma_semaphore, #tpu.memory_space<semaphore_mem>> -> memref<!tpu.dma_semaphore, #tpu.memory_space<semaphore_mem>>
    tpu.enqueue_dma source(%83 : memref<128xf32, #tpu.memory_space<any>>) target(%85 : memref<128xf32, #tpu.memory_space<vmem>>) target_semaphore(%87 : memref<!tpu.dma_semaphore, #tpu.memory_space<semaphore_mem>>)
    %c0_i32_47 = arith.constant 0 : i32
    %c0_i32_48 = arith.constant 0 : i32
    %c0_i32_49 = arith.constant 0 : i32
    %88 = tpu.memref_slice %arg2[%2, %4, %c0_i32_49] : memref<2x8x128xf32, #tpu.memory_space<any>> -> memref<1x1x128xf32, #tpu.memory_space<any>>
    %89 = tpu.memref_squeeze %88 : memref<1x1x128xf32, #tpu.memory_space<any>> -> memref<128xf32, #tpu.memory_space<any>>
    %c0_i32_50 = arith.constant 0 : i32
    %90 = tpu.memref_slice %arg4[%c0_i32_47, %c0_i32_50] : memref<8x128xf32, #tpu.memory_space<vmem>> -> memref<1x128xf32, #tpu.memory_space<vmem>>
    %91 = tpu.memref_squeeze %90 : memref<1x128xf32, #tpu.memory_space<vmem>> -> memref<128xf32, #tpu.memory_space<vmem>>
    %92 = tpu.memref_slice %arg5[%c0_i32_48] : memref<8x!tpu.dma_semaphore, #tpu.memory_space<semaphore_mem>> -> memref<1x!tpu.dma_semaphore, #tpu.memory_space<semaphore_mem>>
    %93 = tpu.memref_squeeze %92 : memref<1x!tpu.dma_semaphore, #tpu.memory_space<semaphore_mem>> -> memref<!tpu.dma_semaphore, #tpu.memory_space<semaphore_mem>>
    tpu.wait_dma2 semaphore(%93 : memref<!tpu.dma_semaphore, #tpu.memory_space<semaphore_mem>>) src(%89 : memref<128xf32, #tpu.memory_space<any>>) dst(%91 : memref<128xf32, #tpu.memory_space<vmem>>)
    %c1_i32_51 = arith.constant 1 : i32
    %c1_i32_52 = arith.constant 1 : i32
    %c0_i32_53 = arith.constant 0 : i32
    %94 = tpu.memref_slice %arg2[%13, %15, %c0_i32_53] : memref<2x8x128xf32, #tpu.memory_space<any>> -> memref<1x1x128xf32, #tpu.memory_space<any>>
    %95 = tpu.memref_squeeze %94 : memref<1x1x128xf32, #tpu.memory_space<any>> -> memref<128xf32, #tpu.memory_space<any>>
    %c0_i32_54 = arith.constant 0 : i32
    %96 = tpu.memref_slice %arg4[%c1_i32_51, %c0_i32_54] : memref<8x128xf32, #tpu.memory_space<vmem>> -> memref<1x128xf32, #tpu.memory_space<vmem>>
    %97 = tpu.memref_squeeze %96 : memref<1x128xf32, #tpu.memory_space<vmem>> -> memref<128xf32, #tpu.memory_space<vmem>>
    %98 = tpu.memref_slice %arg5[%c1_i32_52] : memref<8x!tpu.dma_semaphore, #tpu.memory_space<semaphore_mem>> -> memref<1x!tpu.dma_semaphore, #tpu.memory_space<semaphore_mem>>
    %99 = tpu.memref_squeeze %98 : memref<1x!tpu.dma_semaphore, #tpu.memory_space<semaphore_mem>> -> memref<!tpu.dma_semaphore, #tpu.memory_space<semaphore_mem>>
    tpu.wait_dma2 semaphore(%99 : memref<!tpu.dma_semaphore, #tpu.memory_space<semaphore_mem>>) src(%95 : memref<128xf32, #tpu.memory_space<any>>) dst(%97 : memref<128xf32, #tpu.memory_space<vmem>>)
    %c2_i32_55 = arith.constant 2 : i32
    %c2_i32_56 = arith.constant 2 : i32
    %c0_i32_57 = arith.constant 0 : i32
    %100 = tpu.memref_slice %arg2[%24, %26, %c0_i32_57] : memref<2x8x128xf32, #tpu.memory_space<any>> -> memref<1x1x128xf32, #tpu.memory_space<any>>
    %101 = tpu.memref_squeeze %100 : memref<1x1x128xf32, #tpu.memory_space<any>> -> memref<128xf32, #tpu.memory_space<any>>
    %c0_i32_58 = arith.constant 0 : i32
    %102 = tpu.memref_slice %arg4[%c2_i32_55, %c0_i32_58] : memref<8x128xf32, #tpu.memory_space<vmem>> -> memref<1x128xf32, #tpu.memory_space<vmem>>
    %103 = tpu.memref_squeeze %102 : memref<1x128xf32, #tpu.memory_space<vmem>> -> memref<128xf32, #tpu.memory_space<vmem>>
    %104 = tpu.memref_slice %arg5[%c2_i32_56] : memref<8x!tpu.dma_semaphore, #tpu.memory_space<semaphore_mem>> -> memref<1x!tpu.dma_semaphore, #tpu.memory_space<semaphore_mem>>
    %105 = tpu.memref_squeeze %104 : memref<1x!tpu.dma_semaphore, #tpu.memory_space<semaphore_mem>> -> memref<!tpu.dma_semaphore, #tpu.memory_space<semaphore_mem>>
    tpu.wait_dma2 semaphore(%105 : memref<!tpu.dma_semaphore, #tpu.memory_space<semaphore_mem>>) src(%101 : memref<128xf32, #tpu.memory_space<any>>) dst(%103 : memref<128xf32, #tpu.memory_space<vmem>>)
    %c3_i32_59 = arith.constant 3 : i32
    %c3_i32_60 = arith.constant 3 : i32
    %c0_i32_61 = arith.constant 0 : i32
    %106 = tpu.memref_slice %arg2[%35, %37, %c0_i32_61] : memref<2x8x128xf32, #tpu.memory_space<any>> -> memref<1x1x128xf32, #tpu.memory_space<any>>
    %107 = tpu.memref_squeeze %106 : memref<1x1x128xf32, #tpu.memory_space<any>> -> memref<128xf32, #tpu.memory_space<any>>
    %c0_i32_62 = arith.constant 0 : i32
    %108 = tpu.memref_slice %arg4[%c3_i32_59, %c0_i32_62] : memref<8x128xf32, #tpu.memory_space<vmem>> -> memref<1x128xf32, #tpu.memory_space<vmem>>
    %109 = tpu.memref_squeeze %108 : memref<1x128xf32, #tpu.memory_space<vmem>> -> memref<128xf32, #tpu.memory_space<vmem>>
    %110 = tpu.memref_slice %arg5[%c3_i32_60] : memref<8x!tpu.dma_semaphore, #tpu.memory_space<semaphore_mem>> -> memref<1x!tpu.dma_semaphore, #tpu.memory_space<semaphore_mem>>
    %111 = tpu.memref_squeeze %110 : memref<1x!tpu.dma_semaphore, #tpu.memory_space<semaphore_mem>> -> memref<!tpu.dma_semaphore, #tpu.memory_space<semaphore_mem>>
    tpu.wait_dma2 semaphore(%111 : memref<!tpu.dma_semaphore, #tpu.memory_space<semaphore_mem>>) src(%107 : memref<128xf32, #tpu.memory_space<any>>) dst(%109 : memref<128xf32, #tpu.memory_space<vmem>>)
    %c4_i32_63 = arith.constant 4 : i32
    %c4_i32_64 = arith.constant 4 : i32
    %c0_i32_65 = arith.constant 0 : i32
    %112 = tpu.memref_slice %arg2[%46, %48, %c0_i32_65] : memref<2x8x128xf32, #tpu.memory_space<any>> -> memref<1x1x128xf32, #tpu.memory_space<any>>
    %113 = tpu.memref_squeeze %112 : memref<1x1x128xf32, #tpu.memory_space<any>> -> memref<128xf32, #tpu.memory_space<any>>
    %c0_i32_66 = arith.constant 0 : i32
    %114 = tpu.memref_slice %arg4[%c4_i32_63, %c0_i32_66] : memref<8x128xf32, #tpu.memory_space<vmem>> -> memref<1x128xf32, #tpu.memory_space<vmem>>
    %115 = tpu.memref_squeeze %114 : memref<1x128xf32, #tpu.memory_space<vmem>> -> memref<128xf32, #tpu.memory_space<vmem>>
    %116 = tpu.memref_slice %arg5[%c4_i32_64] : memref<8x!tpu.dma_semaphore, #tpu.memory_space<semaphore_mem>> -> memref<1x!tpu.dma_semaphore, #tpu.memory_space<semaphore_mem>>
    %117 = tpu.memref_squeeze %116 : memref<1x!tpu.dma_semaphore, #tpu.memory_space<semaphore_mem>> -> memref<!tpu.dma_semaphore, #tpu.memory_space<semaphore_mem>>
    tpu.wait_dma2 semaphore(%117 : memref<!tpu.dma_semaphore, #tpu.memory_space<semaphore_mem>>) src(%113 : memref<128xf32, #tpu.memory_space<any>>) dst(%115 : memref<128xf32, #tpu.memory_space<vmem>>)
    %c5_i32_67 = arith.constant 5 : i32
    %c5_i32_68 = arith.constant 5 : i32
    %c0_i32_69 = arith.constant 0 : i32
    %118 = tpu.memref_slice %arg2[%57, %59, %c0_i32_69] : memref<2x8x128xf32, #tpu.memory_space<any>> -> memref<1x1x128xf32, #tpu.memory_space<any>>
    %119 = tpu.memref_squeeze %118 : memref<1x1x128xf32, #tpu.memory_space<any>> -> memref<128xf32, #tpu.memory_space<any>>
    %c0_i32_70 = arith.constant 0 : i32
    %120 = tpu.memref_slice %arg4[%c5_i32_67, %c0_i32_70] : memref<8x128xf32, #tpu.memory_space<vmem>> -> memref<1x128xf32, #tpu.memory_space<vmem>>
    %121 = tpu.memref_squeeze %120 : memref<1x128xf32, #tpu.memory_space<vmem>> -> memref<128xf32, #tpu.memory_space<vmem>>
    %122 = tpu.memref_slice %arg5[%c5_i32_68] : memref<8x!tpu.dma_semaphore, #tpu.memory_space<semaphore_mem>> -> memref<1x!tpu.dma_semaphore, #tpu.memory_space<semaphore_mem>>
    %123 = tpu.memref_squeeze %122 : memref<1x!tpu.dma_semaphore, #tpu.memory_space<semaphore_mem>> -> memref<!tpu.dma_semaphore, #tpu.memory_space<semaphore_mem>>
    tpu.wait_dma2 semaphore(%123 : memref<!tpu.dma_semaphore, #tpu.memory_space<semaphore_mem>>) src(%119 : memref<128xf32, #tpu.memory_space<any>>) dst(%121 : memref<128xf32, #tpu.memory_space<vmem>>)
    %c6_i32_71 = arith.constant 6 : i32
    %c6_i32_72 = arith.constant 6 : i32
    %c0_i32_73 = arith.constant 0 : i32
    %124 = tpu.memref_slice %arg2[%68, %70, %c0_i32_73] : memref<2x8x128xf32, #tpu.memory_space<any>> -> memref<1x1x128xf32, #tpu.memory_space<any>>
    %125 = tpu.memref_squeeze %124 : memref<1x1x128xf32, #tpu.memory_space<any>> -> memref<128xf32, #tpu.memory_space<any>>
    %c0_i32_74 = arith.constant 0 : i32
    %126 = tpu.memref_slice %arg4[%c6_i32_71, %c0_i32_74] : memref<8x128xf32, #tpu.memory_space<vmem>> -> memref<1x128xf32, #tpu.memory_space<vmem>>
    %127 = tpu.memref_squeeze %126 : memref<1x128xf32, #tpu.memory_space<vmem>> -> memref<128xf32, #tpu.memory_space<vmem>>
    %128 = tpu.memref_slice %arg5[%c6_i32_72] : memref<8x!tpu.dma_semaphore, #tpu.memory_space<semaphore_mem>> -> memref<1x!tpu.dma_semaphore, #tpu.memory_space<semaphore_mem>>
    %129 = tpu.memref_squeeze %128 : memref<1x!tpu.dma_semaphore, #tpu.memory_space<semaphore_mem>> -> memref<!tpu.dma_semaphore, #tpu.memory_space<semaphore_mem>>
    tpu.wait_dma2 semaphore(%129 : memref<!tpu.dma_semaphore, #tpu.memory_space<semaphore_mem>>) src(%125 : memref<128xf32, #tpu.memory_space<any>>) dst(%127 : memref<128xf32, #tpu.memory_space<vmem>>)
    %c7_i32_75 = arith.constant 7 : i32
    %c7_i32_76 = arith.constant 7 : i32
    %c0_i32_77 = arith.constant 0 : i32
    %130 = tpu.memref_slice %arg2[%79, %81, %c0_i32_77] : memref<2x8x128xf32, #tpu.memory_space<any>> -> memref<1x1x128xf32, #tpu.memory_space<any>>
    %131 = tpu.memref_squeeze %130 : memref<1x1x128xf32, #tpu.memory_space<any>> -> memref<128xf32, #tpu.memory_space<any>>
    %c0_i32_78 = arith.constant 0 : i32
    %132 = tpu.memref_slice %arg4[%c7_i32_75, %c0_i32_78] : memref<8x128xf32, #tpu.memory_space<vmem>> -> memref<1x128xf32, #tpu.memory_space<vmem>>
    %133 = tpu.memref_squeeze %132 : memref<1x128xf32, #tpu.memory_space<vmem>> -> memref<128xf32, #tpu.memory_space<vmem>>
    %134 = tpu.memref_slice %arg5[%c7_i32_76] : memref<8x!tpu.dma_semaphore, #tpu.memory_space<semaphore_mem>> -> memref<1x!tpu.dma_semaphore, #tpu.memory_space<semaphore_mem>>
    %135 = tpu.memref_squeeze %134 : memref<1x!tpu.dma_semaphore, #tpu.memory_space<semaphore_mem>> -> memref<!tpu.dma_semaphore, #tpu.memory_space<semaphore_mem>>
    tpu.wait_dma2 semaphore(%135 : memref<!tpu.dma_semaphore, #tpu.memory_space<semaphore_mem>>) src(%131 : memref<128xf32, #tpu.memory_space<any>>) dst(%133 : memref<128xf32, #tpu.memory_space<vmem>>)
    %c0 = arith.constant 0 : index
    %c0_79 = arith.constant 0 : index
    %136 = vector.load %arg4[%c0, %c0_79] : memref<8x128xf32, #tpu.memory_space<vmem>>, vector<8x128xf32>
    %c0_80 = arith.constant 0 : index
    %c0_81 = arith.constant 0 : index
    %137 = vector.load %arg3[%c0_80, %c0_81] : memref<8x128xf32, #tpu.memory_space<vmem>>, vector<8x128xf32>
    tpu.vector_store %arg3[%c0_80, %c0_81], %136 {strides = array<i32>} : memref<8x128xf32, #tpu.memory_space<vmem>>, vector<8x128xf32>,
    return
  }
  func.func @transform_1(%arg0: i32, %arg1: memref<2xi32, #tpu.memory_space<smem>>) -> (i32, i32) {
    %c0_i32 = arith.constant 0 : i32
    %c0_i32_0 = arith.constant 0 : i32
    return %arg0, %c0_i32 : i32, i32
  }
}

</mosaic_0001>

<bundles_post_ra>
// kernel: tpu_custom_call.1
= control target key start
LH: loop header
LB: loop body
LE: loop exit
PB: predicated region body
PF: predicated region fallthrough
CT: control target
= control target key end

     0   :  { %s729_s0 = inlined_call_operand.hbm [shape: s32[2], index: 0, kind: input, shape index: {}]   ;;  %s730_s1 = inlined_call_operand.hbm [shape: f32[2,8,128], index: 1, kind: input, shape index: {}]   ;;  %s731_s2 = inlined_call_operand.hbm [shape: f32[8,128], index: 2, kind: output, shape index: {}]  }
   0x1   :  { %s344_s11 = scalar_lea.hbm %s729_s0, 16 }
   0x2   :  { %p345_p0 = scmp.ne.s32.totalorder %s729_s0, %s344_s11  ;;  %p348_p1 = scmp.lt.u32.totalorder %s344_s11, %s729_s0 }
   0x4   :  { %p350_p2 = pnand %p348_p1, %p345_p0 }
   0x6   :  { %353 = shalt.err (!%p350_p2)  }
   0x7   :  { %s588_s16 = smov [#allocation5]  }
   0x8   :  { %8 = dma.hbm_to_smem %s729_s0, 16, %s588_s16, [#allocation4] }
   0x9   :  { %568 = dma.done.wait [#allocation4], 16 }
   0xa   :  { %569 = vsyncadd [#allocation4], 4294967280 }
   0xb   :  { %10 = sfence }
   0xc   :  { %11 = vsyncpa [#allocation7], 0  ;;  %s15_s19 = sld [smem:[#allocation5]]  ;;  %s589_s20 = smov [#allocation2]  }
   0xd   :  { %s27_s21 = sshll.u32 %s589_s20, 4  ;;  %s625_s22 = sld [smem:[#allocation5 + $0x1]]  ;;  %s627_s21 = int_to_ptr.vmem [resolvable:$true] %s27_s21 }
   0xe   :  { %s590_s23 = smov [#allocation2 + $0x1]   ;;  %s591_s25 = smov [#allocation2 + $0x2]  }
   0xf   :  { %s48_s24 = sshll.u32 %s590_s23, 4  ;;  %s69_s26 = sshll.u32 %s591_s25, 4  ;;  %s629_s24 = int_to_ptr.vmem [resolvable:$true] %s48_s24  ;;  %s631_s26 = int_to_ptr.vmem [resolvable:$true] %s69_s26 }
  0x10   :  { %s592_s27 = smov [#allocation2 + $0x3]   ;;  %s356_s8 = scalar_lea.hbm %s730_s1, 256 }
  0x11   :  { %s90_s28 = sshll.u32 %s592_s27, 4  ;;  %s652_s28 = int_to_ptr.vmem [resolvable:$true] %s90_s28 }
  0x12   :  { %s297_s0 = sshll.u32 %s15_s19, 4 }
  0x13   :  { %s19_s3 = scalar_lea.hbm %s730_s1, %s297_s0  ;;  %s320_s4 = sshll.u32 %s625_s22, 4 }
  0x14   :  { %s354_s5 = scalar_lea.hbm %s19_s3, 16  ;;  %p357_p4 = scmp.lt.u32.totalorder %s19_s3, %s730_s1 }
  0x15   :  { %p355_p3 = scmp.ne.s32.totalorder %s19_s3, %s354_s5  ;;  %p358_p5 = scmp.lt.u32.totalorder %s356_s8, %s354_s5 }
  0x16   :  { %p360_p7 = scmp.lt.u32.totalorder %s354_s5, %s19_s3 }
  0x17   :  { %p359_p6 = por %p358_p5, %p357_p4 }
  0x19   :  { %p361_p8 = por %p360_p7, %p359_p6 }
  0x1b   :  { %p362_p9 = pnand %p361_p8, %p355_p3 }
  0x1d   :  { %365 = shalt.err (!%p362_p9)  }
  0x1e   :  { %s366_s11 = scalar_lea.vmem %s627_s21, 16  ;;  %s646_s12 = scalar_lea.vmem %s627_s21, 128 }
  0x1f   :  { %p367_p10 = scmp.ne.s32.totalorder %s627_s21, %s366_s11  ;;  %p371_p11 = scmp.lt.s32.totalorder %s627_s21, %s627_s21 }
  0x20   :  { %p372_p12 = scmp.lt.s32.totalorder %s646_s12, %s366_s11 }
  0x22   :  { %p373_p13 = por %p372_p12, %p371_p11 }
  0x24   :  { %p374_p0 = pnand %p373_p13, %p367_p10 }
  0x26   :  { %377 = shalt.err (!%p374_p0)  }
  0x27   :  { %30 = dma.hbm_to_vmem [thread:$0]  %s19_s3, 16, %s627_s21, [#allocation3] }
  0x28   :  { %s321_s13 = sadd.s32 128, %s320_s4 }
  0x29   :  { %s657_s16 = scalar_lea.hbm %s730_s1, %s321_s13 }
  0x2a   :  { %s378_s17 = scalar_lea.hbm %s657_s16, 16  ;;  %p381_p2 = scmp.lt.u32.totalorder %s657_s16, %s730_s1 }
  0x2b   :  { %p379_p1 = scmp.ne.s32.totalorder %s657_s16, %s378_s17  ;;  %p382_p3 = scmp.lt.u32.totalorder %s356_s8, %s378_s17 }
  0x2c   :  { %p384_p5 = scmp.lt.u32.totalorder %s378_s17, %s657_s16 }
  0x2d   :  { %p383_p4 = por %p382_p3, %p381_p2 }
  0x2f   :  { %p385_p6 = por %p384_p5, %p383_p4 }
  0x31   :  { %p666_p7 = pnand %p385_p6, %p379_p1 }
  0x33   :  { %389 = shalt.err (!%p666_p7)  }
  0x34   :  { %s390_s22 = scalar_lea.vmem %s629_s24, 16  ;;  %p395_p9 = scmp.lt.s32.totalorder %s629_s24, %s627_s21 }
  0x35   :  { %p391_p8 = scmp.ne.s32.totalorder %s629_s24, %s390_s22  ;;  %p396_p10 = scmp.lt.s32.totalorder %s646_s12, %s390_s22 }
  0x37   :  { %p397_p11 = por %p396_p10, %p395_p9 }
  0x39   :  { %p398_p12 = pnand %p397_p11, %p391_p8 }
  0x3b   :  { %401 = shalt.err (!%p398_p12)  }
  0x3c   :  { %51 = dma.hbm_to_vmem [thread:$0]  %s657_s16, 16, %s629_s24, [#allocation3 + $0x1] }
  0x3d   :  { %413 = shalt.err (!%p666_p7)  }
  0x3e   :  { %s414_s1 = scalar_lea.vmem %s631_s26, 16  ;;  %p419_p0 = scmp.lt.s32.totalorder %s631_s26, %s627_s21 }
  0x3f   :  { %p415_p13 = scmp.ne.s32.totalorder %s631_s26, %s414_s1  ;;  %p420_p1 = scmp.lt.s32.totalorder %s646_s12, %s414_s1 }
  0x41   :  { %p421_p2 = por %p420_p1, %p419_p0 }
  0x43   :  { %p422_p3 = pnand %p421_p2, %p415_p13 }
  0x45   :  { %425 = shalt.err (!%p422_p3)  }
  0x46   :  { %72 = dma.hbm_to_vmem [thread:$0]  %s657_s16, 16, %s631_s26, [#allocation3 + $0x2] }
  0x47   :  { %437 = shalt.err (!%p666_p7)  }
  0x48   :  { %s438_s23 = scalar_lea.vmem %s652_s28, 16  ;;  %p443_p5 = scmp.lt.s32.totalorder %s652_s28, %s627_s21 }
  0x49   :  { %p439_p4 = scmp.ne.s32.totalorder %s652_s28, %s438_s23  ;;  %p444_p6 = scmp.lt.s32.totalorder %s646_s12, %s438_s23 }
  0x4b   :  { %p445_p8 = por %p444_p6, %p443_p5 }
  0x4d   :  { %p446_p9 = pnand %p445_p8, %p439_p4 }
  0x4f   :  { %449 = shalt.err (!%p446_p9)  }
  0x50   :  { %93 = dma.hbm_to_vmem [thread:$0]  %s657_s16, 16, %s652_s28, [#allocation3 + $0x3] }
  0x51   :  { %s593_s24 = smov [#allocation2 + $0x4]   ;;  %s594_s26 = smov [#allocation2 + $0x5]  }
  0x52   :  { %s111_s25 = sshll.u32 %s593_s24, 4  ;;  %s132_s0 = sshll.u32 %s594_s26, 4  ;;  %s112_s25 = int_to_ptr.vmem [resolvable:$true] %s111_s25  ;;  %s133_s0 = int_to_ptr.vmem [resolvable:$true] %s132_s0 }
  0x53   :  { %461 = shalt.err (!%p666_p7)  }
  0x54   :  { %s462_s27 = scalar_lea.vmem %s112_s25, 16  ;;  %p467_p11 = scmp.lt.s32.totalorder %s112_s25, %s627_s21 }
  0x55   :  { %p463_p10 = scmp.ne.s32.totalorder %s112_s25, %s462_s27  ;;  %p468_p12 = scmp.lt.s32.totalorder %s646_s12, %s462_s27 }
  0x57   :  { %p469_p13 = por %p468_p12, %p467_p11 }
  0x59   :  { %p470_p0 = pnand %p469_p13, %p463_p10 }
  0x5b   :  { %473 = shalt.err (!%p470_p0)  }
  0x5c   :  { %114 = dma.hbm_to_vmem [thread:$0]  %s657_s16, 16, %s112_s25, [#allocation3 + $0x4] }
  0x5d   :  { %485 = shalt.err (!%p666_p7)  }
  0x5e   :  { %s486_s28 = scalar_lea.vmem %s133_s0, 16  ;;  %p491_p2 = scmp.lt.s32.totalorder %s133_s0, %s627_s21 }
  0x5f   :  { %p487_p1 = scmp.ne.s32.totalorder %s133_s0, %s486_s28  ;;  %p492_p3 = scmp.lt.s32.totalorder %s646_s12, %s486_s28 }
  0x61   :  { %p493_p4 = por %p492_p3, %p491_p2 }
  0x63   :  { %p494_p5 = pnand %p493_p4, %p487_p1 }
  0x65   :  { %497 = shalt.err (!%p494_p5)  }
  0x66   :  { %135 = dma.hbm_to_vmem [thread:$0]  %s657_s16, 16, %s133_s0, [#allocation3 + $0x5] }
  0x67   :  { %s595_s29 = smov [#allocation2 + $0x6]   ;;  %s596_s3 = smov [#allocation2 + $0x7]  }
  0x68   :  { %s153_s30 = sshll.u32 %s595_s29, 4  ;;  %s174_s4 = sshll.u32 %s596_s3, 4  ;;  %s154_s30 = int_to_ptr.vmem [resolvable:$true] %s153_s30  ;;  %s175_s4 = int_to_ptr.vmem [resolvable:$true] %s174_s4 }
  0x69   :  { %509 = shalt.err (!%p666_p7)  }
  0x6a   :  { %s510_s5 = scalar_lea.vmem %s154_s30, 16  ;;  %p515_p8 = scmp.lt.s32.totalorder %s154_s30, %s627_s21 }
  0x6b   :  { %p511_p6 = scmp.ne.s32.totalorder %s154_s30, %s510_s5  ;;  %p516_p9 = scmp.lt.s32.totalorder %s646_s12, %s510_s5 }
  0x6d   :  { %p517_p10 = por %p516_p9, %p515_p8 }
  0x6f   :  { %p518_p11 = pnand %p517_p10, %p511_p6 }
  0x71   :  { %521 = shalt.err (!%p518_p11)  }
  0x72   :  { %156 = dma.hbm_to_vmem [thread:$0]  %s657_s16, 16, %s154_s30, [#allocation3 + $0x6] }
  0x73   :  { %533 = shalt.err (!%p666_p7)  }
  0x74   :  { %s534_s6 = scalar_lea.vmem %s175_s4, 16  ;;  %p539_p13 = scmp.lt.s32.totalorder %s175_s4, %s627_s21 }
  0x75   :  { %p535_p12 = scmp.ne.s32.totalorder %s175_s4, %s534_s6  ;;  %p540_p0 = scmp.lt.s32.totalorder %s646_s12, %s534_s6 }
  0x77   :  { %p541_p1 = por %p540_p0, %p539_p13 }
  0x79   :  { %p542_p2 = pnand %p541_p1, %p535_p12 }
  0x7b   :  { %545 = shalt.err (!%p542_p2)  }
  0x7c   :  { %177 = dma.hbm_to_vmem [thread:$0]  %s657_s16, 16, %s175_s4, [#allocation3 + $0x7] }
  0x7d   :  { %570 = dma.done.wait [#allocation3], 16 }
  0x7e   :  { %571 = vsyncadd [#allocation3], 4294967280 }
  0x7f   :  { %572 = dma.done.wait [#allocation3 + $0x1], 16 }
  0x80   :  { %573 = vsyncadd [#allocation3 + $0x1], 4294967280 }
  0x81   :  { %574 = dma.done.wait [#allocation3 + $0x2], 16 }
  0x82   :  { %575 = vsyncadd [#allocation3 + $0x2], 4294967280 }
  0x83   :  { %576 = dma.done.wait [#allocation3 + $0x3], 16 }
  0x84   :  { %577 = vsyncadd [#allocation3 + $0x3], 4294967280 }
  0x85   :  { %578 = dma.done.wait [#allocation3 + $0x4], 16 }
  0x86   :  { %579 = vsyncadd [#allocation3 + $0x4], 4294967280 }
  0x87   :  { %580 = dma.done.wait [#allocation3 + $0x5], 16 }
  0x88   :  { %581 = vsyncadd [#allocation3 + $0x5], 4294967280 }
  0x89   :  { %582 = dma.done.wait [#allocation3 + $0x6], 16 }
  0x8a   :  { %583 = vsyncadd [#allocation3 + $0x6], 4294967280 }
  0x8b   :  { %584 = dma.done.wait [#allocation3 + $0x7], 16 }
  0x8c   :  { %585 = vsyncadd [#allocation3 + $0x7], 4294967280  ;;  %s597_s21 = smov [#allocation6]   ;;  %v194_v0 = vld [vmem:[#allocation2] sm:$0xff] }
  0x8d   :  { %s202_s7 = sshll.u32 %s597_s21, 4  ;;  %195 = vst [vmem:[#allocation6] sm:$0xff] %v194_v0  ;;  %s203_s7 = int_to_ptr.vmem [resolvable:$true] %s202_s7 }
  0x8e   :  { %s546_s8 = scalar_lea.vmem %s203_s7, 128  ;;  %p551_p3 = scmp.lt.s32.totalorder %s203_s7, %s203_s7 }
  0x8f   :  { %p547_p7 = scmp.ne.s32.totalorder %s203_s7, %s546_s8  ;;  %p552_p4 = scmp.lt.s32.totalorder %s546_s8, %s546_s8 }
  0x91   :  { %p553_p5 = por %p552_p4, %p551_p3 }
  0x93   :  { %p554_p6 = pnand %p553_p5, %p547_p7 }
  0x95   :  { %557 = shalt.err (!%p554_p6)
}
  0x96   :  { %s558_s11 = scalar_lea.hbm %s731_s2, 128 }
  0x97   :  { %p559_p8 = scmp.ne.s32.totalorder %s731_s2, %s558_s11  ;;  %p562_p9 = scmp.lt.u32.totalorder %s558_s11, %s731_s2 }
  0x99   :  { %p564_p10 = pnand %p562_p9, %p559_p8 }
  0x9b   :  { %567 = shalt.err (!%p564_p10)
}
  0x9c   :  { %205 = dma.vmem_to_hbm [thread:$0]  %s203_s7, 128, %s731_s2, [#allocation7]  }
  0x9d   :  { %586 = dma.done.wait [#allocation7], 128  }
  0x9e   :  { %587 = vsyncadd [#allocation7], 4294967168 }
  0x9f   :  { %209 = vsyncpa [#allocation7], 1 }
  0xa0   :  { %210 = vsyncmov [#allocation3] }
  0xa3   :  { %s211_s18 = vpop.sfrf %210 }
  0xa4   :  { %p312_p11 = scmp.ne.s32.totalorder %s211_s18, 0 }
  0xa6   :  { %215 = shalt.err (%p312_p11)  }
  0xa7   :  { %217 = vsyncmov [#allocation3 + $0x1] }
  0xaa   :  { %s218_s19 = vpop.sfrf %217 }
  0xab   :  { %p313_p12 = scmp.ne.s32.totalorder %s218_s19, 0 }
  0xad   :  { %222 = shalt.err (%p313_p12)  }
  0xae   :  { %224 = vsyncmov [#allocation3 + $0x2] }
  0xb1   :  { %s225_s20 = vpop.sfrf %224 }
  0xb2   :  { %p314_p13 = scmp.ne.s32.totalorder %s225_s20, 0 }
  0xb4   :  { %229 = shalt.err (%p314_p13)  }
  0xb5   :  { %231 = vsyncmov [#allocation3 + $0x3] }
  0xb8   :  { %s232_s22 = vpop.sfrf %231 }
  0xb9   :  { %p315_p0 = scmp.ne.s32.totalorder %s232_s22, 0 }
  0xbb   :  { %236 = shalt.err (%p315_p0)  }
  0xbc   :  { %238 = vsyncmov [#allocation3 + $0x4] }
  0xbf   :  { %s239_s2 = vpop.sfrf %238 }
  0xc0   :  { %p316_p1 = scmp.ne.s32.totalorder %s239_s2, 0 }
  0xc2   :  { %243 = shalt.err (%p316_p1)  }
  0xc3   :  { %245 = vsyncmov [#allocation3 + $0x5] }
  0xc6   :  { %s246_s1 = vpop.sfrf %245 }
  0xc7   :  { %p317_p2 = scmp.ne.s32.totalorder %s246_s1, 0 }
  0xc9   :  { %250 = shalt.err (%p317_p2)  }
  0xca   :  { %252 = vsyncmov [#allocation3 + $0x6] }
  0xcd   :  { %s253_s23 = vpop.sfrf %252 }
  0xce   :  { %p318_p7 = scmp.ne.s32.totalorder %s253_s23, 0 }
  0xd0   :  { %257 = shalt.err (%p318_p7)  }
  0xd1   :  { %259 = vsyncmov [#allocation3 + $0x7] }
  0xd4   :  { %s260_s24 = vpop.sfrf %259 }
  0xd5   :  { %p319_p3 = scmp.ne.s32.totalorder %s260_s24, 0 }
  0xd7   :  { %264 = shalt.err (%p319_p3)  }

</bundles_post_ra>
